<compile_context>
chip_gen: v7x
topology: tpu7x:2x2x1
jax: 0.10.0
libtpu: 0.0.40
codegen_flags: <defaults>
</compile_context>

<pallas_src>
import numpy as np
import jax
import jax.numpy as jnp
from jax.experimental import pallas as pl
from jax.experimental.pallas import tpu as pltpu


def _strictly_tril_size(n):
    return n * (n - 1) // 2


def _elu(x):
    # ELU with alpha=1 (matches nn.ELU default).  No clamp on the exp arg:
    # jnp.where selects away the exp lanes where x > 0, and a stray inf in the
    # discarded branch of a select is harmless.
    return jnp.where(x > 0, x, jnp.exp(x) - 1.0)


# ---------------------------------------------------------------------------
# Kernel
# ---------------------------------------------------------------------------
def _make_coder_kernel(n_hidden, K, stacked):
    """Kernel factory.

    Body: n_hidden Linear+ELU layers, ONE fused (pre-packed) head matmul that
    lands directly in the lane-dense output layout, a lane-masked -ELU on the
    logvar lanes, and one small one-hot dot that places exp(0.5*logvar) on the
    chol diagonal.  No concatenates, no narrow lane slices.
    """

    def tail(h, whp_ref, bhp_ref, md_ref, out_ref):
        # packed_raw = [mu | logvar_raw | rho | chol_strict_lower | 0-pad]
        packed = jnp.dot(h, whp_ref[...], preferred_element_type=jnp.float32) + bhp_ref[...]
        lane = jax.lax.broadcasted_iota(jnp.int32, packed.shape, 1)
        lv_mask = jnp.logical_and(lane >= K, lane < 2 * K)
        # in-place -ELU on the logvar lanes only (VPU, lane-masked select)
        packed = jnp.where(lv_mask, -_elu(packed), packed)
        # diagA = exp(0.5*logvar) lives on the logvar lanes, zero elsewhere;
        # a one-hot [128,128] dot routes it onto the chol diagonal columns.
        diag_vec = jnp.where(lv_mask, jnp.exp(0.5 * packed), 0.0)
        out_ref[...] = packed + jnp.dot(
            diag_vec, md_ref[...], preferred_element_type=jnp.float32)

    if stacked:
        def kernel(*refs):
            x_ref = refs[0]
            w0_ref = refs[1]
            idx = 2
            if n_hidden > 1:
                ws_ref = refs[idx]          # [n_hidden-1, H, H]
                idx += 1
            bs_ref = refs[idx]              # [n_hidden, 1, H]
            idx += 1
            whp_ref, bhp_ref, md_ref, out_ref = refs[idx:idx + 4]

            h = x_ref[...].astype(jnp.float32)
            h = _elu(jnp.dot(h, w0_ref[...], preferred_element_type=jnp.float32)
                     + bs_ref[0])
            for li in range(1, n_hidden):
                h = _elu(jnp.dot(h, ws_ref[li - 1],
                                 preferred_element_type=jnp.float32)
                         + bs_ref[li])
            tail(h, whp_ref, bhp_ref, md_ref, out_ref)
    else:
        def kernel(*refs):
            x_ref = refs[0]
            hid = refs[1:1 + 2 * n_hidden]
            whp_ref, bhp_ref, md_ref, out_ref = refs[1 + 2 * n_hidden:]

            h = x_ref[...].astype(jnp.float32)
            for li in range(n_hidden):
                h = _elu(jnp.dot(h, hid[2 * li][...],
                                 preferred_element_type=jnp.float32)
                         + hid[2 * li + 1][...])
            tail(h, whp_ref, bhp_ref, md_ref, out_ref)

    return kernel


# ---------------------------------------------------------------------------
# Host-side parameter prep
# ---------------------------------------------------------------------------
def init_coder_params(key, input_size, hidden_size, output_size):
    """Deterministic PyTorch-Linear-like init (uniform +/- 1/sqrt(fan_in)).
    Weights stored as [in, out]."""
    params = {}
    sizes = [input_size] + list(hidden_size)
    names = [f"h{i}" for i in range(len(hidden_size))] + ["mu", "logvar", "chol"]
    ins = sizes[:-1] + [hidden_size[-1]] * 3
    outs = sizes[1:] + [output_size, output_size, _strictly_tril_size(output_size)]
    for name, fin, fout in zip(names, ins, outs):
        key, kw, kb = jax.random.split(key, 3)
        bound = 1.0 / np.sqrt(fin)
        params[name + "_w"] = jax.random.uniform(kw, (fin, fout), jnp.float32, -bound, bound)
        params[name + "_b"] = jax.random.uniform(kb, (1, fout), jnp.float32, -bound, bound)
    return params


def _fold_head_weights(params, K, P, out_pad):
    """Fold the linear part of the output packing into the head weight/bias.

    Produces [H, out_pad] / [1, out_pad] such that  h @ W + b  directly emits
    [mu | logvar_raw | rho | chol_strict_lower(from rho) | zero pad].
    Columns are exact copies (numpy index placement, no host matmul), so the
    passthrough outputs are bit-identical to the unfused head matmuls.
    """
    wh = np.concatenate([np.asarray(params["mu_w"]),
                         np.asarray(params["logvar_w"]),
                         np.asarray(params["chol_w"])], axis=1)      # [H, 2K+P]
    bh = np.concatenate([np.asarray(params["mu_b"]),
                         np.asarray(params["logvar_b"]),
                         np.asarray(params["chol_b"])], axis=1)      # [1, 2K+P]
    H = wh.shape[0]
    chol_off = 2 * K + P
    rows, cols = np.tril_indices(K, -1)          # matches torch.tril_indices(K,K,-1)

    wp = np.zeros((H, out_pad), np.float32)
    bp = np.zeros((1, out_pad), np.float32)
    wp[:, :2 * K + P] = wh
    bp[:, :2 * K + P] = bh
    # duplicate the rho columns into the strictly-lower chol positions
    wp[:, chol_off + rows * K + cols] = wh[:, 2 * K + np.arange(P)]
    bp[:, chol_off + rows * K + cols] = bh[:, 2 * K + np.arange(P)]
    return jnp.asarray(wp), jnp.asarray(bp)


def _make_diag_matrix(K, P, out_pad):
    """One-hot [out_pad, out_pad] matrix routing the logvar lanes (holding
    exp(0.5*logvar)) onto the chol diagonal columns."""
    chol_off = 2 * K + P
    M = np.zeros((out_pad, out_pad), np.float32)
    for k in range(K):
        M[K + k, chol_off + k * K + k] = 1.0
    return jnp.asarray(M)


# ---------------------------------------------------------------------------
# Wrapper
# ---------------------------------------------------------------------------
def create_coder_forward(x, params, hidden_size, output_size, bm=None,
                         single_buffer_weights=False):
    B, D_in = x.shape
    n_hidden = len(hidden_size)
    K = output_size
    P = _strictly_tril_size(K)

    OUT_W = 2 * K + P + K * K                     # mu | logvar | rho | chol_flat
    OUT_PAD = ((OUT_W + 127) // 128) * 128        # lane-dense packed output width

    # ---- batch blocking --------------------------------------------------
    B8 = ((B + 7) // 8) * 8                       # sublane alignment
    if bm is None:
        if B8 < 128:
            # tiny batch: one block, per-step overhead dominates
            bm = B8
        else:
            # split into >= 2 grid steps so v7x can shard the "parallel" axis
            # across its 2 TensorCores; cap at 1024 rows/block (~86% of the
            # HBM writeback roofline for large batches).
            bm = min(1024, ((pl.cdiv(B8, 2) + 7) // 8) * 8)
    bm = max(8, (bm // 8) * 8)
    B_pad = pl.cdiv(B8, bm) * bm
    if B_pad != B:
        x = jnp.pad(x, ((0, B_pad - B), (0, 0)))
    grid = (B_pad // bm,)

    # ---- fused / pre-packed head weights and the diagonal placement ------
    whp, bhp = _fold_head_weights(params, K, P, OUT_PAD)   # [H, OUT_PAD], [1, OUT_PAD]
    Mdiag = _make_diag_matrix(K, P, OUT_PAD)               # [OUT_PAD, OUT_PAD]

    def full_spec(shape):
        nd = len(shape)
        if single_buffer_weights:
            # Constant operands never change across grid steps -> single
            # buffer.  Useful on v7x (64 MiB VMEM) with large hidden widths;
            # irrelevant at small H, so off by default.
            return pl.BlockSpec(shape, lambda i, _n=nd: (0,) * _n,
                                pipeline_mode=pl.Buffered(1))
        return pl.BlockSpec(shape, lambda i, _n=nd: (0,) * _n)

    # ---- operands: stack hidden weights / biases when widths are equal ---
    stacked = len(set(hidden_size)) == 1
    in_specs = [pl.BlockSpec((bm, D_in), lambda i: (i, 0))]     # x (batch-blocked)
    operands = [x]
    if stacked:
        w0 = params["h0_w"]
        in_specs.append(full_spec(w0.shape))
        operands.append(w0)
        if n_hidden > 1:
            wstack = jnp.stack([params[f"h{li}_w"] for li in range(1, n_hidden)], axis=0)
            in_specs.append(full_spec(wstack.shape))
            operands.append(wstack)
        bstack = jnp.stack([params[f"h{li}_b"] for li in range(n_hidden)], axis=0)
        in_specs.append(full_spec(bstack.shape))
        operands.append(bstack)
    else:
        for li in range(n_hidden):
            w = params[f"h{li}_w"]
            b = params[f"h{li}_b"]
            in_specs += [full_spec(w.shape), full_spec(b.shape)]
            operands += [w, b]
    in_specs += [full_spec(whp.shape), full_spec(bhp.shape), full_spec(Mdiag.shape)]
    operands += [whp, bhp, Mdiag]

    out_spec = pl.BlockSpec((bm, OUT_PAD), lambda i: (i, 0))
    out_shape = jax.ShapeDtypeStruct((B_pad, OUT_PAD), jnp.float32)

    kernel = _make_coder_kernel(n_hidden, K, stacked)

    # NOTE: if hidden widths grow to >= ~2048, K-tile the hidden matmuls with
    # an extra grid axis + f32 accumulator and cast the dots to bf16; at the
    # shapes used here all weights fit VMEM many times over.
    packed = pl.pallas_call(
        kernel,
        out_shape=out_shape,
        grid_spec=pltpu.PrefetchScalarGridSpec(
            num_scalar_prefetch=0,
            grid=grid,
            in_specs=in_specs,
            out_specs=out_spec,
        ),
        compiler_params=pltpu.CompilerParams(
            dimension_semantics=("parallel",)),
    )(*operands)

    packed = packed[:B]
    mu = packed[:, :K]
    logvar = packed[:, K:2 * K]
    rho = packed[:, 2 * K:2 * K + P]
    chol = packed[:, 2 * K + P:2 * K + P + K * K].reshape(B, K, K)
    # TODO(synk): torch.distributions.MultivariateNormal(loc=mu, scale_tril=chol)
    # has no Pallas equivalent; we return (mu, [logvar, rho], chol) instead.
    return mu, [logvar, rho], chol


# ---------------------------------------------------------------------------
# Pure-JAX reference (mirrors the PyTorch forward, scale_tril path)
# ---------------------------------------------------------------------------
def reference_forward(x, params, hidden_size, output_size):
    K = output_size
    h = x
    for li in range(len(hidden_size)):
        h = _elu(h @ params[f"h{li}_w"] + params[f"h{li}_b"])
    mu = h @ params["mu_w"] + params["mu_b"]
    logvar = -_elu(h @ params["logvar_w"] + params["logvar_b"])
    rho = h @ params["chol_w"] + params["chol_b"]
    diagA = jnp.exp(0.5 * logvar)
    rows, cols = np.tril_indices(K, -1)
    chol = jnp.zeros((x.shape[0], K, K), jnp.float32).at[:, rows, cols].set(rho) \
        + jnp.einsum("bk,kj->bkj", diagA, jnp.eye(K, dtype=jnp.float32))
    return mu, logvar, rho, chol


if __name__ == "__main__":
    # small shapes consistent with the module (Linear-only MLP on [B, input_size])
    B, input_size, output_size = 16, 16, 8
    hidden_size = [32, 32]

    key = jax.random.PRNGKey(0)
    key, kx = jax.random.split(key)
    x = jax.random.normal(kx, (B, input_size), jnp.float32)
    params = init_coder_params(key, input_size, hidden_size, output_size)

    mu, (logvar, rho), chol = create_coder_forward(x, params, hidden_size, output_size)
    jax.block_until_ready((mu, logvar, rho, chol))

    mu_r, lv_r, rho_r, chol_r = reference_forward(x, params, hidden_size, output_size)
    assert np.allclose(np.asarray(mu), np.asarray(mu_r), atol=1e-5, rtol=1e-5)
    assert np.allclose(np.asarray(logvar), np.asarray(lv_r), atol=1e-5, rtol=1e-5)
    assert np.allclose(np.asarray(rho), np.asarray(rho_r), atol=1e-5, rtol=1e-5)
    assert np.allclose(np.asarray(chol), np.asarray(chol_r), atol=1e-5, rtol=1e-5)

    print("KERNEL_OK")
</pallas_src>

<mosaic_0001>
module attributes {stable_mosaic.version = 11 : i64} {
  func.func @kernel(%arg0: i32, %arg1: memref<16x16xf32, #tpu.memory_space<vmem>>, %arg2: memref<16x32xf32, #tpu.memory_space<vmem>>, %arg3: memref<1x32x32xf32, #tpu.memory_space<vmem>>, %arg4: memref<2x1x32xf32, #tpu.memory_space<vmem>>, %arg5: memref<32x128xf32, #tpu.memory_space<vmem>>, %arg6: memref<1x128xf32, #tpu.memory_space<vmem>>, %arg7: memref<128x128xf32, #tpu.memory_space<vmem>>, %arg8: memref<16x128xf32, #tpu.memory_space<vmem>>) attributes {dimension_semantics = [#tpu.dimension_semantics<parallel>], iteration_bounds = array<i64: 1>, scalar_prefetch = 0 : i64, scratch_operands = 0 : i64, tpu.core_type = #tpu.core_type<tc>, window_params = [{transform_indices = @transform_0, window_bounds = array<i64: 16, 16>}, {pipeline_mode = #tpu.pipeline_mode<synchronous>, transform_indices = @transform_1, window_bounds = array<i64: 16, 32>}, {pipeline_mode = #tpu.pipeline_mode<synchronous>, transform_indices = @transform_2, window_bounds = array<i64: 1, 32, 32>}, {pipeline_mode = #tpu.pipeline_mode<synchronous>, transform_indices = @transform_3, window_bounds = array<i64: 2, 1, 32>}, {pipeline_mode = #tpu.pipeline_mode<synchronous>, transform_indices = @transform_4, window_bounds = array<i64: 32, 128>}, {pipeline_mode = #tpu.pipeline_mode<synchronous>, transform_indices = @transform_5, window_bounds = array<i64: 1, 128>}, {pipeline_mode = #tpu.pipeline_mode<synchronous>, transform_indices = @transform_6, window_bounds = array<i64: 128, 128>}, {transform_indices = @transform_7, window_bounds = array<i64: 16, 128>}]} {
    %c0 = arith.constant 0 : index
    %c0_0 = arith.constant 0 : index
    %0 = vector.load %arg1[%c0, %c0_0] : memref<16x16xf32, #tpu.memory_space<vmem>>, vector<16x16xf32>
    %c0_1 = arith.constant 0 : index
    %c0_2 = arith.constant 0 : index
    %1 = vector.load %arg2[%c0_1, %c0_2] : memref<16x32xf32, #tpu.memory_space<vmem>>, vector<16x32xf32>
    %cst = arith.constant dense<0.000000e+00> : vector<16x32xf32>
    %2 = tpu.matmul %0, %1, %cst {dimension_numbers = #tpu.dot_dimension_numbers<[1], [0], [0], [1], [0, 0, 1, 1], [], []>} : vector<16x16xf32>, vector<16x32xf32>, vector<16x32xf32> -> vector<16x32xf32>
    %c0_3 = arith.constant 0 : index
    %c0_4 = arith.constant 0 : index
    %c0_5 = arith.constant 0 : index
    %3 = vector.load %arg4[%c0_3, %c0_4, %c0_5] : memref<2x1x32xf32, #tpu.memory_space<vmem>>, vector<1x1x32xf32>
    %4 = vector.shape_cast %3 : vector<1x1x32xf32> to vector<1x32xf32>
    %5 = vector.broadcast %4 : vector<1x32xf32> to vector<16x32xf32>
    %6 = arith.addf %2, %5 : vector<16x32xf32>
    %cst_6 = arith.constant 0.000000e+00 : f32
    %7 = vector.broadcast %cst_6 : f32 to vector<16x32xf32>
    %8 = arith.cmpf ogt, %6, %7 : vector<16x32xf32>
    %9 = math.exp %6 : vector<16x32xf32>
    %cst_7 = arith.constant 1.000000e+00 : f32
    %10 = vector.broadcast %cst_7 : f32 to vector<16x32xf32>
    %11 = arith.subf %9, %10 : vector<16x32xf32>
    %12 = arith.select %8, %6, %11 : vector<16x32xi1>, vector<16x32xf32>
    %c0_8 = arith.constant 0 : index
    %c0_9 = arith.constant 0 : index
    %c0_10 = arith.constant 0 : index
    %13 = vector.load %arg3[%c0_8, %c0_9, %c0_10] : memref<1x32x32xf32, #tpu.memory_space<vmem>>, vector<1x32x32xf32>
    %14 = vector.shape_cast %13 : vector<1x32x32xf32> to vector<32x32xf32>
    %cst_11 = arith.constant dense<0.000000e+00> : vector<16x32xf32>
    %15 = tpu.matmul %12, %14, %cst_11 {dimension_numbers = #tpu.dot_dimension_numbers<[1], [0], [0], [1], [0, 0, 1, 1], [], []>} : vector<16x32xf32>, vector<32x32xf32>, vector<16x32xf32> -> vector<16x32xf32>
    %c1 = arith.constant 1 : index
    %c0_12 = arith.constant 0 : index
    %c0_13 = arith.constant 0 : index
    %16 = vector.load %arg4[%c1, %c0_12, %c0_13] : memref<2x1x32xf32, #tpu.memory_space<vmem>>, vector<1x1x32xf32>
    %17 = vector.shape_cast %16 : vector<1x1x32xf32> to vector<1x32xf32>
    %18 = vector.broadcast %17 : vector<1x32xf32> to vector<16x32xf32>
    %19 = arith.addf %15, %18 : vector<16x32xf32>
    %cst_14 = arith.constant 0.000000e+00 : f32
    %20 = vector.broadcast %cst_14 : f32 to vector<16x32xf32>
    %21 = arith.cmpf ogt, %19, %20 : vector<16x32xf32>
    %22 = math.exp %19 : vector<16x32xf32>
    %cst_15 = arith.constant 1.000000e+00 : f32
    %23 = vector.broadcast %cst_15 : f32 to vector<16x32xf32>
    %24 = arith.subf %22, %23 : vector<16x32xf32>
    %25 = arith.select %21, %19, %24 : vector<16x32xi1>, vector<16x32xf32>
    %c0_16 = arith.constant 0 : index
    %c0_17 = arith.constant 0 : index
    %26 = vector.load %arg5[%c0_16, %c0_17] : memref<32x128xf32, #tpu.memory_space<vmem>>, vector<32x128xf32>
    %cst_18 = arith.constant dense<0.000000e+00> : vector<16x128xf32>
    %27 = tpu.matmul %25, %26, %cst_18 {dimension_numbers = #tpu.dot_dimension_numbers<[1], [0], [0], [1], [0, 0, 1, 1], [], []>} : vector<16x32xf32>, vector<32x128xf32>, vector<16x128xf32> -> vector<16x128xf32>
    %c0_19 = arith.constant 0 : index
    %c0_20 = arith.constant 0 : index
    %28 = vector.load %arg6[%c0_19, %c0_20] : memref<1x128xf32, #tpu.memory_space<vmem>>, vector<1x128xf32>
    %29 = vector.broadcast %28 : vector<1x128xf32> to vector<16x128xf32>
    %30 = arith.addf %27, %29 : vector<16x128xf32>
    %31 = tpu.iota {dimensions = array<i32: 1>} : vector<16x128xi32>
    %c8_i32 = arith.constant 8 : i32
    %32 = vector.broadcast %c8_i32 : i32 to vector<16x128xi32>
    %33 = arith.cmpi sge, %31, %32 : vector<16x128xi32>
    %c16_i32 = arith.constant 16 : i32
    %34 = vector.broadcast %c16_i32 : i32 to vector<16x128xi32>
    %35 = arith.cmpi slt, %31, %34 : vector<16x128xi32>
    %36 = arith.andi %33, %35 : vector<16x128xi1>
    %cst_21 = arith.constant 0.000000e+00 : f32
    %37 = vector.broadcast %cst_21 : f32 to vector<16x128xf32>
    %38 = arith.cmpf ogt, %30, %37 : vector<16x128xf32>
    %39 = math.exp %30 : vector<16x128xf32>
    %cst_22 = arith.constant 1.000000e+00 : f32
    %40 = vector.broadcast %cst_22 : f32 to vector<16x128xf32>
    %41 = arith.subf %39, %40 : vector<16x128xf32>
    %42 = arith.select %38, %30, %41 : vector<16x128xi1>, vector<16x128xf32>
    %cst_23 = arith.constant 0.000000e+00 : f32
    %43 = vector.broadcast %cst_23 : f32 to vector<16x128xf32>
    %44 = arith.subf %43, %42 : vector<16x128xf32>
    %45 = arith.select %36, %44, %30 : vector<16x128xi1>, vector<16x128xf32>
    %cst_24 = arith.constant 5.000000e-01 : f32
    %46 = vector.broadcast %cst_24 : f32 to vector<16x128xf32>
    %47 = arith.mulf %46, %45 : vector<16x128xf32>
    %48 = math.exp %47 : vector<16x128xf32>
    %cst_25 = arith.constant 0.000000e+00 : f32
    %49 = vector.broadcast %cst_25 : f32 to vector<16x128xf32>
    %50 = arith.select %36, %48, %49 : vector<16x128xi1>, vector<16x128xf32>
    %c0_26 = arith.constant 0 : index
    %c0_27 = arith.constant 0 : index
    %51 = vector.load %arg7[%c0_26, %c0_27] : memref<128x128xf32, #tpu.memory_space<vmem>>, vector<128x128xf32>
    %cst_28 = arith.constant dense<0.000000e+00> : vector<16x128xf32>
    %52 = tpu.matmul %50, %51, %cst_28 {dimension_numbers = #tpu.dot_dimension_numbers<[1], [0], [0], [1], [0, 0, 1, 1], [], []>} : vector<16x128xf32>, vector<128x128xf32>, vector<16x128xf32> -> vector<16x128xf32>
    %53 = arith.addf %45, %52 : vector<16x128xf32>
    %c0_29 = arith.constant 0 : index
    %c0_30 = arith.constant 0 : index
    %54 = vector.load %arg8[%c0_29, %c0_30] : memref<16x128xf32, #tpu.memory_space<vmem>>, vector<16x128xf32>
    tpu.vector_store %arg8[%c0_29, %c0_30], %53 {strides = array<i32>} : memref<16x128xf32, #tpu.memory_space<vmem>>, vector<16x128xf32>,
    return
  }
  func.func @transform_0(%arg0: i32) -> (i32, i32) {
    %c0_i32 = arith.constant 0 : i32
    %c0_i32_0 = arith.constant 0 : i32
    return %arg0, %c0_i32 : i32, i32
  }
  func.func @transform_1(%arg0: i32) -> (i32, i32) {
    %c0_i32 = arith.constant 0 : i32
    %c0_i32_0 = arith.constant 0 : i32
    %c0_i32_1 = arith.constant 0 : i32
    return %c0_i32, %c0_i32_0 : i32, i32
  }
  func.func @transform_2(%arg0: i32) -> (i32, i32, i32) {
    %c0_i32 = arith.constant 0 : i32
    %c0_i32_0 = arith.constant 0 : i32
    %c0_i32_1 = arith.constant 0 : i32
    %c0_i32_2 = arith.constant 0 : i32
    return %c0_i32, %c0_i32_0, %c0_i32_1 : i32, i32, i32
  }
  func.func @transform_3(%arg0: i32) -> (i32, i32, i32) {
    %c0_i32 = arith.constant 0 : i32
    %c0_i32_0 = arith.constant 0 : i32
    %c0_i32_1 = arith.constant 0 : i32
    %c0_i32_2 = arith.constant 0 : i32
    return %c0_i32, %c0_i32_0, %c0_i32_1 : i32, i32, i32
  }
  func.func @transform_4(%arg0: i32) -> (i32, i32) {
    %c0_i32 = arith.constant 0 : i32
    %c0_i32_0 = arith.constant 0 : i32
    %c0_i32_1 = arith.constant 0 : i32
    return %c0_i32, %c0_i32_0 : i32, i32
  }
  func.func @transform_5(%arg0: i32) -> (i32, i32) {
    %c0_i32 = arith.constant 0 : i32
    %c0_i32_0 = arith.constant 0 : i32
    %c0_i32_1 = arith.constant 0 : i32
    return %c0_i32, %c0_i32_0 : i32, i32
  }
  func.func @transform_6(%arg0: i32) -> (i32, i32) {
    %c0_i32 = arith.constant 0 : i32
    %c0_i32_0 = arith.constant 0 : i32
    %c0_i32_1 = arith.constant 0 : i32
    return %c0_i32, %c0_i32_0 : i32, i32
  }
  func.func @transform_7(%arg0: i32) -> (i32, i32) {
    %c0_i32 = arith.constant 0 : i32
    %c0_i32_0 = arith.constant 0 : i32
    return %arg0, %c0_i32 : i32, i32
  }
}

</mosaic_0001>

<bundles_post_ra>
// kernel: tpu_custom_call.1
= control target key start
LH: loop header
LB: loop body
LE: loop exit
PB: predicated region body
PF: predicated region fallthrough
CT: control target
= control target key end

     0   :  { %12 = vsyncpa [#allocation3], 0  ;;  %s1032_s0 = inlined_call_operand.hbm [shape: f32[16,16], index: 0, kind: input, shape index: {}]   ;;  %s1033_s1 = inlined_call_operand.hbm [shape: f32[16,32], index: 1, kind: input, shape index: {}]   ;;  %s1034_s2 = inlined_call_operand.hbm [shape: f32[1,32,32], index: 2, kind: input, shape index: {}]   ;;  %s1035_s3 = inlined_call_operand.vmem [shape: f32[2,1,32], index: 3, kind: input, shape index: {}]   ;;  %s1036_s4 = inlined_call_operand.hbm [shape: f32[32,128], index: 4, kind: input, shape index: {}]   ;;  %s1037_s5 = inlined_call_operand.vmem [shape: f32[1,128], index: 5, kind: input, shape index: {}]   ;;  %s1038_s6 = inlined_call_operand.hbm [shape: f32[128,128], index: 6, kind: input, shape index: {}]   ;;  %s1039_s7 = inlined_call_operand.hbm [shape: f32[16,128], index: 7, kind: output, shape index: {}]  }
   0x1   :  { %13 = vsyncpa [#allocation6], 0 }
   0x2   :  { %14 = vsyncpa [#allocation9], 0 }
   0x3   :  { %15 = vsyncpa [#allocation4], 0  ;;  %s867_s24 = smov [#allocation5]   ;;  %s868_s26 = smov [#allocation8]  }
   0x4   :  { %s33_s25 = sshll.u32 %s867_s24, 4  ;;  %s59_s27 = sshll.u32 %s868_s26, 4  ;;  %s34_s25 = int_to_ptr.vmem [resolvable:$true] %s33_s25  ;;  %s915_s27 = int_to_ptr.vmem [resolvable:$true] %s59_s27 }
   0x5   :  { %s727_s30 = scalar_lea.hbm %s1033_s1, 256 }
   0x6   :  { %p728_p0 = scmp.ne.s32.totalorder %s1033_s1, %s727_s30  ;;  %p731_p1 = scmp.lt.u32.totalorder %s727_s30, %s1033_s1 }
   0x8   :  { %p733_p2 = pnand %p731_p1, %p728_p0 }
   0xa   :  { %736 = shalt.err (!%p733_p2)
}
   0xb   :  { %s737_s12 = scalar_lea.vmem %s34_s25, 256  ;;  %p742_p4 = scmp.lt.s32.totalorder %s34_s25, %s34_s25 }
   0xc   :  { %p738_p3 = scmp.ne.s32.totalorder %s34_s25, %s737_s12  ;;  %p743_p5 = scmp.lt.s32.totalorder %s737_s12, %s737_s12 }
   0xe   :  { %p744_p6 = por %p743_p5, %p742_p4 }
  0x10   :  { %p745_p7 = pnand %p744_p6, %p738_p3 }
  0x12   :  { %748 = shalt.err (!%p745_p7)
}
  0x13   :  { %s869_s13 = smov 128   ;;  %s870_s14 = smov 8  }
  0x14   :  { %39 = dma.hbm_to_vmem [thread:$0]  %s1033_s1, 256, %s34_s25, [#allocation6], %s869_s13, %s869_s13, %s870_s14  }
  0x15   :  { %s749_s19 = scalar_lea.hbm %s1036_s4, 512 }
  0x16   :  { %p750_p8 = scmp.ne.s32.totalorder %s1036_s4, %s749_s19  ;;  %p753_p9 = scmp.lt.u32.totalorder %s749_s19, %s1036_s4 }
  0x18   :  { %p755_p10 = pnand %p753_p9, %p750_p8 }
  0x1a   :  { %758 = shalt.err (!%p755_p10)
}
  0x1b   :  { %s759_s24 = scalar_lea.vmem %s915_s27, 512  ;;  %p764_p12 = scmp.lt.s32.totalorder %s915_s27, %s915_s27 }
  0x1c   :  { %p760_p11 = scmp.ne.s32.totalorder %s915_s27, %s759_s24  ;;  %p765_p13 = scmp.lt.s32.totalorder %s759_s24, %s759_s24 }
  0x1e   :  { %p766_p0 = por %p765_p13, %p764_p12 }
  0x20   :  { %p767_p1 = pnand %p766_p0, %p760_p11 }
  0x22   :  { %770 = shalt.err (!%p767_p1)
}
  0x23   :  { %65 = dma.hbm_to_vmem [thread:$0]  %s1036_s4, 512, %s915_s27, [#allocation9], %s869_s13, %s869_s13, %s870_s14  }
  0x24   :  { %s871_s26 = smov [#allocation2]   ;;  %s872_s29 = smov [#allocation7]  }
  0x25   :  { %s21_s28 = sshll.u32 %s871_s26, 4  ;;  %s45_s30 = sshll.u32 %s872_s29, 4  ;;  %s22_s28 = int_to_ptr.vmem [resolvable:$true] %s21_s28  ;;  %s952_s30 = int_to_ptr.vmem [resolvable:$true] %s45_s30 }
  0x26   :  { %s771_s10 = scalar_lea.hbm %s1032_s0, 256 }
  0x27   :  { %p772_p2 = scmp.ne.s32.totalorder %s1032_s0, %s771_s10  ;;  %p775_p3 = scmp.lt.u32.totalorder %s771_s10, %s1032_s0 }
  0x29   :  { %p777_p4 = pnand %p775_p3, %p772_p2 }
  0x2b   :  { %780 = shalt.err (!%p777_p4)
}
  0x2c   :  { %s781_s4 = scalar_lea.vmem %s22_s28, 256  ;;  %p786_p6 = scmp.lt.s32.totalorder %s22_s28, %s22_s28 }
  0x2d   :  { %p782_p5 = scmp.ne.s32.totalorder %s22_s28, %s781_s4  ;;  %p787_p7 = scmp.lt.s32.totalorder %s781_s4, %s781_s4 }
  0x2f   :  { %p788_p8 = por %p787_p7, %p786_p6 }
  0x31   :  { %p789_p9 = pnand %p788_p8, %p782_p5 }
  0x33   :  { %792 = shalt.err (!%p789_p9)
}
  0x34   :  { %27 = dma.hbm_to_vmem [thread:$0]  %s1032_s0, 256, %s22_s28, [#allocation3], %s869_s13, %s869_s13, %s870_s14  }
  0x35   :  { %s793_s20 = scalar_lea.hbm %s1034_s2, 512 }
  0x36   :  { %p794_p10 = scmp.ne.s32.totalorder %s1034_s2, %s793_s20  ;;  %p797_p11 = scmp.lt.u32.totalorder %s793_s20, %s1034_s2 }
  0x38   :  { %p799_p12 = pnand %p797_p11, %p794_p10 }
  0x3a   :  { %802 = shalt.err (!%p799_p12)
}
  0x3b   :  { %s803_s1 = scalar_lea.vmem %s952_s30, 512  ;;  %p808_p0 = scmp.lt.s32.totalorder %s952_s30, %s952_s30 }
  0x3c   :  { %p804_p13 = scmp.ne.s32.totalorder %s952_s30, %s803_s1  ;;  %p809_p1 = scmp.lt.s32.totalorder %s803_s1, %s803_s1 }
  0x3e   :  { %p810_p2 = por %p809_p1, %p808_p0 }
  0x40   :  { %p811_p3 = pnand %p810_p2, %p804_p13 }
  0x42   :  { %814 = shalt.err (!%p811_p3)
}
  0x43   :  { %51 = dma.hbm_to_vmem [thread:$0]  %s1034_s2, 512, %s952_s30, [#allocation6], %s869_s13, %s869_s13, %s870_s14  }
  0x44   :  { %s873_s26 = smov [#allocation10]   ;;  %s815_s9 = scalar_lea.hbm %s1038_s6, 2048 }
  0x45   :  { %s73_s28 = sshll.u32 %s873_s26, 4  ;;  %p816_p4 = scmp.ne.s32.totalorder %s1038_s6, %s815_s9  ;;  %s74_s28 = int_to_ptr.vmem [resolvable:$true] %s73_s28 }
  0x46   :  { %p819_p5 = scmp.lt.u32.totalorder %s815_s9, %s1038_s6 }
  0x48   :  { %p821_p6 = pnand %p819_p5, %p816_p4 }
  0x4a   :  { %824 = shalt.err (!%p821_p6)
}
  0x4b   :  { %s825_s16 = scalar_lea.vmem %s74_s28, 2048  ;;  %p830_p8 = scmp.lt.s32.totalorder %s74_s28, %s74_s28 }
  0x4c   :  { %p826_p7 = scmp.ne.s32.totalorder %s74_s28, %s825_s16  ;;  %p831_p9 = scmp.lt.s32.totalorder %s825_s16, %s825_s16 }
  0x4e   :  { %p832_p10 = por %p831_p9, %p830_p8 }
  0x50   :  { %p833_p11 = pnand %p832_p10, %p826_p7 }
  0x52   :  { %836 = shalt.err (!%p833_p11)
}
  0x53   :  { %79 = dma.hbm_to_vmem [thread:$0]  %s1038_s6, 2048, %s74_s28, [#allocation9], %s869_s13, %s869_s13, %s870_s14  }
  0x54   :  { %859 = dma.done.wait [#allocation3], 256  }
  0x55   :  { %860 = vsyncadd [#allocation3], 4294967040 }
  0x56   :  { %861 = dma.done.wait [#allocation6], 768  }
  0x57   :  { %862 = vsyncadd [#allocation6], 4294966528 }
  0x58   :  { %863 = dma.done.wait [#allocation9], 2560  }
  0x59   :  { %864 = vsyncadd [#allocation9], 4294964736  ;;  %vm106_vm0 = vcmask 130048   ;;  %v97_v0 = vld [vmem:[#allocation5] sm:$0xff]  ;;  %v98_v1 = vld [vmem:[#allocation5 + $0x8] sm:$0xff]  ;;  %vm210_vm1 = vcmask 261120  }
  0x5a   :  { %v95_v2 = vld [vmem:[#allocation2] sm:$0xff]  ;;  %v651_v3 = vpack.c.bf16 %v98_v1, %v97_v0  ;;  %v96_v4 = vld [vmem:[#allocation2 + $0x8] sm:$0xff]  ;;  %v200_v8 = vld [vmem:[#allocation7 + $0x10] sm:$0xff] }
  0x5b   :  { %591 = vmatprep.mubr.msk.f32.mxu0 %vm106_vm0, %v95_v2  ;;  %v198_v5 = vld [vmem:[#allocation7] sm:$0xff]  ;;  %v199_v6 = vld [vmem:[#allocation7 + $0x8] sm:$0xff]  ;;  %v201_v9 = vld [vmem:[#allocation7 + $0x18] sm:$0xff] }
  0x5c   :  { %652 = vmatprep.subr.bf16.mxu0 %v651_v3  ;;  %v655_v7 = vpack.c.bf16 %v199_v6, %v198_v5  ;;  %v659_v10 = vpack.c.bf16 %v201_v9, %v200_v8  ;;  %v535_v11 = vld [vmem:[%s1035_s3] ss:$0 sm:$0xff]  ;;  %v303_v25 = vld [vmem:[#allocation8 + $0x8] sm:$0xff]  ;;  %v304_v27 = vld [vmem:[#allocation8 + $0x10] sm:$0xff] }
  0x5d   :  { %654 = vmatpush3.bf16.msra.mxu0 %v651_v3  ;;  %v302_v24 = vld [vmem:[#allocation8] sm:$0xff]  ;;  %v305_v28 = vld [vmem:[#allocation8 + $0x18] sm:$0xff]  ;;  %v422_v44 = vld [vmem:[#allocation10 + $0x8] sm:$0xff] }
  0x5e   :  { %656 = vmatprep.subr.bf16.mxu0 %v655_v7  ;;  %v663_v26 = vpack.c.bf16 %v303_v25, %v302_v24  ;;  %v667_v29 = vpack.c.bf16 %v305_v28, %v304_v27  ;;  %v541_v30 = vld [vmem:[%s1035_s3 + $0x1] ss:$0 sm:$0xff]  ;;  %v423_v46 = vld [vmem:[#allocation10 + $0x10] sm:$0xff]  ;;  %v424_v47 = vld [vmem:[#allocation10 + $0x18] sm:$0xff] }
  0x5f   :  { %v421_v43 = vld [vmem:[#allocation10] sm:$0xff]  ;;  %v675_v48 = vpack.c.bf16 %v424_v47, %v423_v46  ;;  %v426_v50 = vld [vmem:[#allocation10 + $0x28] sm:$0xff]  ;;  %v427_v52 = vld [vmem:[#allocation10 + $0x30] sm:$0xff] }
  0x60   :  { %592 = vmatmul.mubr.msk.f32.vlgmr.msra.gmra.mrb[0].mxu0 %vm106_vm0, %v96_v4  ;;  %v671_v45 = vpack.c.bf16 %v422_v44, %v421_v43  ;;  %v425_v49 = vld [vmem:[#allocation10 + $0x20] sm:$0xff]  ;;  %v428_v53 = vld [vmem:[#allocation10 + $0x38] sm:$0xff]  ;;  %v430_v56 = vld [vmem:[#allocation10 + $0x48] sm:$0xff] }
  0x61   :  { %658 = vmatpush3.bf16.msra.mxu0 %v655_v7  ;;  %v679_v51 = vpack.c.bf16 %v426_v50, %v425_v49  ;;  %v683_v54 = vpack.c.bf16 %v428_v53, %v427_v52  ;;  %v429_v55 = vld [vmem:[#allocation10 + $0x40] sm:$0xff]  ;;  %v431_v57 = vld [vmem:[#allocation10 + $0x50] sm:$0xff]  ;;  %v432_v59 = vld [vmem:[#allocation10 + $0x58] sm:$0xff] }
  0x62   :  { %660 = vmatprep.subr.bf16.mxu0 %v659_v10  ;;  %672 = vmatprep.subr.bf16.mxu1 %v671_v45  ;;  %v687_v58 = vpack.c.bf16 %v430_v56, %v429_v55  ;;  %v691_v60 = vpack.c.bf16 %v432_v59, %v431_v57  ;;  %v433_v61 = vld [vmem:[#allocation10 + $0x60] sm:$0xff]  ;;  %v434_v62 = vld [vmem:[#allocation10 + $0x68] sm:$0xff]  ;;  %v435_v0 = vld [vmem:[#allocation10 + $0x70] sm:$0xff] }
  0x63   :  { %674 = vmatpush3.bf16.msra.mxu1 %v671_v45  ;;  %v695_v63 = vpack.c.bf16 %v434_v62, %v433_v61  ;;  %v436_v1 = vld [vmem:[#allocation10 + $0x78] sm:$0xff]  ;;  %v546_v3 = vld [vmem:[%s1037_s5] ss:$0 sm:$0xff]  ;;  %s874_s5 = smov [#allocation11]  }
  0x64   :  { %676 = vmatprep.subr.bf16.mxu1 %v675_v48  ;;  %v699_v2 = vpack.c.bf16 %v436_v1, %v435_v0  ;;  %s521_s19 = sshll.u32 %s874_s5, 4  ;;  %s522_s19 = int_to_ptr.vmem [resolvable:$true] %s521_s19 }
  0x65   :  { %662 = vmatpush3.bf16.msra.mxu0 %v659_v10  ;;  %v394_v10 = vlaneseq  ;;  %s837_s20 = scalar_lea.vmem %s522_s19, 256  ;;  %p842_p13 = scmp.lt.s32.totalorder %s522_s19, %s522_s19 }
  0x66   :  { %664 = vmatprep.subr.bf16.mxu0 %v663_v26  ;;  %p838_p12 = scmp.ne.s32.totalorder %s522_s19, %s837_s20  ;;  %p843_p0 = scmp.lt.s32.totalorder %s837_s20, %s837_s20 }
  0x67   :  { %678 = vmatpush3.bf16.msra.mxu1 %v675_v48 }
  0x68   :  { %680 = vmatprep.subr.bf16.mxu1 %v679_v51  ;;  %p844_p1 = por %p843_p0, %p842_p13 }
  0x6a   :  { %p845_p2 = pnand %p844_p1, %p838_p12 }
  0x6b   :  { %682 = vmatpush3.bf16.msra.mxu1 %v679_v51 }
  0x6c   :  { %684 = vmatprep.subr.bf16.mxu1 %v683_v54 }
  0x6f   :  { %686 = vmatpush3.bf16.msra.mxu1 %v683_v54 }
  0x70   :  { %688 = vmatprep.subr.bf16.mxu1 %v687_v58 }
  0x73   :  { %690 = vmatpush3.bf16.msra.mxu1 %v687_v58 }
  0x74   :  { %692 = vmatprep.subr.bf16.mxu1 %v691_v60 }
  0x77   :  { %694 = vmatpush3.bf16.msra.mxu1 %v691_v60 }
  0x78   :  { %696 = vmatprep.subr.bf16.mxu1 %v695_v63 }
  0x7b   :  { %698 = vmatpush3.bf16.msra.mxu1 %v695_v63 }
  0x7c   :  { %700 = vmatprep.subr.bf16.mxu1 %v699_v2 }
  0x7f   :  { %702 = vmatpush3.bf16.msra.mxu1 %v699_v2 }
 0x133   :  { %v593_v12 = vpop.f32.mrb[0].mxu0 }
 0x134   :  { %v185_v13 = vadd.f32 %v593_v12, %v535_v11  ;;  %v179_v14 = vpop.f32.mrb[1].mxu0 }
 0x135   :  { %v180_v15 = vadd.f32 %v535_v11, %v179_v14  ;;  %v395_v11 = vand.u32 127, %v394_v10 }
 0x136   :  { %v192_v16 = vmul.f32 1.442695, %v185_v13  ;;  %vm189_vm3 = vcmp.gt.f32.partialorder %v185_v13, 0.0 }
 0x137   :  { %v190_v17 = vmul.f32 1.442695, %v180_v15  ;;  %vm188_vm2 = vcmp.gt.f32.partialorder %v180_v15, 0.0  ;;  %vm396_vm6 = vcmp.ge.s32.totalorder %v395_v11, 8  ;;  %vm397_vm7 = vcmp.lt.s32.totalorder %v395_v11, 16 }
 0x138   :  { %711 = vpow2.f32 %v192_v16  ;;  %vm398_vm10 = vmand %vm396_vm6, %vm397_vm7 }
 0x139   :  { %713 = vpow2.f32 %v190_v17 }
 0x142   :  { %v712_v18 = vpop.eup %711 }
 0x143   :  { %v714_v19 = vpop.eup %713  ;;  %v539_v20 = vadd.f32 -1.0, %v712_v18 }
 0x144   :  { %v538_v21 = vadd.f32 -1.0, %v714_v19 }
 0x145   :  { %v197_v23 = vsel %vm189_vm3, %v185_v13, %v539_v20 }
 0x146   :  { %v196_v22 = vsel %vm188_vm2, %v180_v15, %v538_v21 }
 0x147   :  { %602 = vmatprep.mubr.msk.f32.mxu0 %vm210_vm1, %v196_v22 }
 0x148   :  { %603 = vmatmul.mubr.msk.f32.vlgmr.msra.gmra.mrb[2].mxu0 %vm210_vm1, %v197_v23 }
 0x149   :  { %666 = vmatpush3.bf16.msra.mxu0 %v663_v26 }
 0x14a   :  { %668 = vmatprep.subr.bf16.mxu0 %v667_v29 }
 0x14d   :  { %670 = vmatpush3.bf16.msra.mxu0 %v667_v29 }
 0x21b   :  { %v604_v31 = vpop.f32.mrb[2].mxu0 }
 0x21c   :  { %v289_v32 = vadd.f32 %v604_v31, %v541_v30  ;;  %v283_v33 = vpop.f32.mrb[3].mxu0 }
 0x21d   :  { %v284_v34 = vadd.f32 %v541_v30, %v283_v33 }
 0x21e   :  { %v296_v35 = vmul.f32 1.442695, %v289_v32  ;;  %vm293_vm5 = vcmp.gt.f32.partialorder %v289_v32, 0.0 }
 0x21f   :  { %v294_v36 = vmul.f32 1.442695, %v284_v34  ;;  %vm292_vm4 = vcmp.gt.f32.partialorder %v284_v34, 0.0 }
 0x220   :  { %715 = vpow2.f32 %v296_v35 }
 0x221   :  { %717 = vpow2.f32 %v294_v36 }
 0x22a   :  { %v716_v37 = vpop.eup %715 }
 0x22b   :  { %v718_v38 = vpop.eup %717  ;;  %v545_v39 = vadd.f32 -1.0, %v716_v37 }
 0x22c   :  { %v544_v40 = vadd.f32 -1.0, %v718_v38 }
 0x22d   :  { %v301_v42 = vsel %vm293_vm5, %v289_v32, %v545_v39 }
 0x22e   :  { %v300_v41 = vsel %vm292_vm4, %v284_v34, %v544_v40 }
 0x22f   :  { %613 = vmatprep.mubr.msk.f32.mxu0 %vm210_vm1, %v300_v41 }
 0x230   :  { %614 = vmatmul.mubr.msk.f32.vlgmr.msra.gmra.mrb[4].mxu0 %vm210_vm1, %v301_v42 }
 0x303   :  { %v615_v4 = vpop.f32.mrb[4].mxu0 }
 0x304   :  { %v391_v5 = vadd.f32 %v615_v4, %v546_v3  ;;  %v385_v6 = vpop.f32.mrb[5].mxu0 }
 0x305   :  { %v386_v7 = vadd.f32 %v546_v3, %v385_v6 }
 0x306   :  { %v403_v8 = vmul.f32 1.442695, %v391_v5  ;;  %vm400_vm8 = vcmp.gt.f32.partialorder %v391_v5, 0.0 }
 0x307   :  { %v401_v9 = vmul.f32 1.442695, %v386_v7  ;;  %vm399_vm9 = vcmp.gt.f32.partialorder %v386_v7, 0.0 }
 0x308   :  { %719 = vpow2.f32 %v403_v8 }
 0x309   :  { %721 = vpow2.f32 %v401_v9 }
 0x312   :  { %v720_v12 = vpop.eup %719 }
 0x313   :  { %v722_v13 = vpop.eup %721  ;;  %v550_v14 = vadd.f32 -1.0, %v720_v12 }
 0x314   :  { %v549_v15 = vadd.f32 -1.0, %v722_v13 }
 0x315   :  { %v408_v16 = vsel %vm400_vm8, %v391_v5, %v550_v14 }
 0x316   :  { %v410_v17 = vsub.f32 0.0, %v408_v16  ;;  %v407_v18 = vsel %vm399_vm9, %v386_v7, %v549_v15 }
 0x317   :  { %v409_v19 = vsub.f32 0.0, %v407_v18 }
 0x318   :  { %v412_v20 = vsel %vm398_vm10, %v410_v17, %v391_v5 }
 0x319   :  { %v411_v21 = vsel %vm398_vm10, %v409_v19, %v386_v7  ;;  %v414_v22 = vmul.f32 0.5, %v412_v20 }
 0x31a   :  { %v413_v23 = vmul.f32 0.5, %v411_v21 }
 0x31b   :  { %v417_v24 = vmul.f32 1.442695, %v414_v22 }
 0x31c   :  { %v415_v25 = vmul.f32 1.442695, %v413_v23 }
 0x31e   :  { %723 = vpow2.f32 %v415_v25 }
 0x31f   :  { %725 = vpow2.f32 %v417_v24 }
 0x328   :  { %v724_v26 = vpop.eup %723 }
 0x329   :  { %v726_v27 = vpop.eup %725  ;;  %648 = vmatprep.mubr.msk.f32.mxu1 %vm398_vm10, %v724_v26 }
 0x32a   :  { %649 = vmatmul.mubr.msk.f32.vlgmr.msra.gmra.mrb[0].mxu1 %vm398_vm10, %v726_v27 }
 0x3fd   :  { %v650_v28 = vpop.f32.mrb[0].mxu1 }
 0x3fe   :  { %v513_v29 = vadd.f32 %v650_v28, %v412_v20  ;;  %v503_v30 = vpop.f32.mrb[1].mxu1 }
 0x3ff   :  { %v512_v31 = vadd.f32 %v503_v30, %v411_v21 }
 0x400   :  { %515 = vst [vmem:[#allocation11 + $0x8] sm:$0xff] %v513_v29 }
 0x401   :  { %514 = vst [vmem:[#allocation11] sm:$0xff] %v512_v31 }
 0x402   :  { %848 = shalt.err (!%p845_p2)
}
 0x403   :  { %s849_s23 = scalar_lea.hbm %s1039_s7, 256 }
 0x404   :  { %p850_p3 = scmp.ne.s32.totalorder %s1039_s7, %s849_s23  ;;  %p853_p4 = scmp.lt.u32.totalorder %s849_s23, %s1039_s7 }
 0x406   :  { %p855_p5 = pnand %p853_p4, %p850_p3 }
 0x408   :  { %858 = shalt.err (!%p855_p5)
}
 0x409   :  { %527 = dma.vmem_to_hbm [thread:$0]  %s522_s19, 256, %s1039_s7, [#allocation4], %s869_s13, %s869_s13, %s870_s14  }
 0x40a   :  { %865 = dma.done.wait [#allocation4], 256  }
 0x40b   :  { %866 = vsyncadd [#allocation4], 4294967040 }
 0x40c   :  { %531 = vsyncpa [#allocation3], 1 }
 0x40d   :  { %532 = vsyncpa [#allocation6], 1 }
 0x40e   :  { %533 = vsyncpa [#allocation9], 1 }
 0x40f   :  { %534 = vsyncpa [#allocation4], 1 }

</bundles_post_ra>
